<compile_context>
chip_gen: v6e
topology: v6e:2x2x1
jax: 0.10.0
libtpu: 0.0.40
codegen_flags: <defaults>
</compile_context>

<pallas_src>
import jax
import jax.numpy as jnp
from jax import lax
from jax.experimental import pallas as pl
from jax.experimental.pallas import tpu as pltpu


def _pick_seq_tile(S: int, max_tile: int = 512) -> int:
    """Largest power-of-two multiple-of-8 tile (<= max_tile) dividing S; else S."""
    if S % 8 != 0:
        return S  # whole-sequence fallback
    ts = 8
    while ts * 2 <= min(S, max_tile) and S % (ts * 2) == 0:
        ts *= 2
    return ts


def _row_loop(n_rows: int, body_fn):
    """Run body_fn(r) for r in [0, n_rows): unrolled for small n, fori_loop otherwise."""
    if n_rows <= 32:
        for r in range(n_rows):
            body_fn(r)
    else:
        def body(r, carry):
            body_fn(r)
            return carry

        lax.fori_loop(0, n_rows, body, 0, unroll=8)


def transformer_embedding(tokens, tok_tbl, pos_tbl, *, seq_tile=None,
                          table_vmem_budget_bytes=16 * 1024 * 1024):
    """tokens: (B, S) int32; tok_tbl: (V, D); pos_tbl: (max_len, D) -> (B, S, D)."""
    B, S = tokens.shape
    V, D = tok_tbl.shape
    max_len, D2 = pos_tbl.shape
    assert D == D2, "d_model mismatch between token and positional tables"
    assert S <= max_len, f"Cannot forward sequence of length {S}, max_seq_len is {max_len}"
    assert pos_tbl.dtype == tok_tbl.dtype

    TS = seq_tile if seq_tile is not None else _pick_seq_tile(S)
    assert S % TS == 0
    assert TS % 8 == 0 or TS == S, "sequence tile must be a multiple of 8"
    # TODO(synk): D not a multiple of 128 lowers to masked output stores; pad D on real
    # models for fully lane-dense stores (demo D=32 uses full-dim blocks, still correct).

    n_st = S // TS
    out_dtype = tok_tbl.dtype
    itemsize = jnp.dtype(out_dtype).itemsize
    table_bytes = V * D * itemsize
    block_bytes = TS * D * itemsize
    use_resident_table = table_bytes <= table_vmem_budget_bytes

    # Flatten ids to 1D (avoids 2D SMEM padding) and clamp so the row gather can never
    # address outside the table (PyTorch would raise on OOB ids; we clamp silently).
    # TODO(synk): for very large B*S, DMA per-tile id slices into SMEM scratch instead of
    # scalar-prefetching all ids (1D SMEM pads to next power of two).
    ids_flat = jnp.clip(tokens.reshape(-1).astype(jnp.int32), 0, V - 1)

    if use_resident_table:
        # ---- Fast path: whole embedding table resident in VMEM -------------------
        def kernel(ids_ref, tbl_ref, pos_ref, out_ref, row_buf):
            st = pl.program_id(0)
            b = pl.program_id(1)
            base = b * S + st * TS

            def gather_row(r):
                tid = ids_ref[base + r]
                row_buf[r, :] = tbl_ref[tid, :]

            _row_loop(TS, gather_row)
            # Single vectorized add streamed straight into the output block.
            out_ref[...] = (row_buf[...] + pos_ref[...]).astype(out_ref.dtype)

        grid_spec = pltpu.PrefetchScalarGridSpec(
            num_scalar_prefetch=1,  # flattened token ids -> SMEM
            grid=(n_st, B),
            in_specs=[
                # Constant block index -> table DMA'd once, resident for all steps.
                pl.BlockSpec((V, D), lambda st, b, ids: (0, 0)),
                # Positional tile depends only on st -> resident across the batch axis.
                pl.BlockSpec((TS, D), lambda st, b, ids: (st, 0)),
            ],
            out_specs=pl.BlockSpec((None, TS, D), lambda st, b, ids: (b, st, 0)),
            scratch_shapes=[pltpu.VMEM((TS, D), out_dtype)],
        )
        dim_sem = ("parallel", "parallel")  # both axes independent; feeds both v7x TCs
        vmem_est = 2 * table_bytes + 4 * block_bytes + block_bytes
    else:
        # ---- Large-vocab path: manual double-buffered HBM gather ------------------
        def kernel(ids_ref, tok_hbm, pos_ref, out_ref, tok_buf, sem):
            st = pl.program_id(0)
            b = pl.program_id(1)
            nb = pl.num_programs(1)
            slot = b % 2

            def issue_gather(b_idx, slot_idx):
                base = b_idx * S + st * TS

                def issue_row(r):
                    tid = ids_ref[base + r]
                    pltpu.make_async_copy(
                        tok_hbm.at[pl.ds(tid, 1), :],
                        tok_buf.at[slot_idx, pl.ds(r, 1), :],
                        sem.at[slot_idx],  # all TS rows signal ONE semaphore per slot
                    ).start()

                _row_loop(TS, issue_row)

            # Prime the gather for the first batch element of this sequence tile.
            @pl.when(b == 0)
            def _():
                issue_gather(0, 0)

            # Prefetch the next batch element's gather into the other slot.
            @pl.when(b + 1 < nb)
            def _():
                issue_gather(b + 1, 1 - slot)

            # Single coalesced wait sized to the whole slot (TS rows x D bytes total).
            pltpu.make_async_copy(
                tok_hbm.at[pl.ds(0, TS), :],
                tok_buf.at[slot],
                sem.at[slot],
            ).wait()

            out_ref[...] = (tok_buf[slot] + pos_ref[...]).astype(out_ref.dtype)

        grid_spec = pltpu.PrefetchScalarGridSpec(
            num_scalar_prefetch=1,
            grid=(n_st, B),
            in_specs=[
                pl.BlockSpec(memory_space=pl.ANY),                  # table stays in HBM
                pl.BlockSpec((TS, D), lambda st, b, ids: (st, 0)),  # pos tile, resident
            ],
            out_specs=pl.BlockSpec((None, TS, D), lambda st, b, ids: (b, st, 0)),
            scratch_shapes=[
                pltpu.VMEM((2, TS, D), out_dtype),   # double-buffered gather target
                pltpu.SemaphoreType.DMA((2,)),       # one aggregate semaphore per slot
            ],
        )
        dim_sem = ("parallel", "arbitrary")  # inner b axis carries the prefetch chain
        vmem_est = 6 * block_bytes

    # Explicit scoped-VMEM budget: floor at the 16 MiB v5e default, cap under v7x's
    # 64 MiB per-TC physical VMEM.
    vmem_limit = int(min(64 * 1024 * 1024, max(2 * vmem_est, 16 * 1024 * 1024)))

    cost = pl.CostEstimate(
        flops=B * S * D,
        transcendentals=0,
        bytes_accessed=(2 * B * S * D + S * D) * itemsize + 4 * B * S + table_bytes,
    )

    # TODO(synk): training-mode dropout (pltpu.prng_seed + prng_random_bits mask) not
    # implemented; inference semantics (identity) here.
    return pl.pallas_call(
        kernel,
        out_shape=jax.ShapeDtypeStruct((B, S, D), out_dtype),
        grid_spec=grid_spec,
        compiler_params=pltpu.CompilerParams(
            dimension_semantics=dim_sem,
            vmem_limit_bytes=vmem_limit,
        ),
        cost_estimate=cost,
    )(ids_flat, tok_tbl, pos_tbl)


if __name__ == "__main__":
    # Small, deterministic setup consistent with the module's __init__.
    vocab_size = 32
    d_model = 32
    max_len = 16
    padding_idx = 0
    drop_prob = 0.1  # nn.Dropout is identity under inference semantics
    B, S = 2, 8

    key = jax.random.PRNGKey(0)
    k_tok, k_pos, k_ids = jax.random.split(key, 3)

    # nn.Embedding-style init (N(0,1)); padding_idx row zeroed, as torch does.
    tok_tbl = jax.random.normal(k_tok, (vocab_size, d_model), dtype=jnp.float32)
    tok_tbl = tok_tbl.at[padding_idx].set(0.0)
    pos_tbl = jax.random.normal(k_pos, (max_len, d_model), dtype=jnp.float32)
    tokens = jax.random.randint(k_ids, (B, S), 0, vocab_size, dtype=jnp.int32)

    # Pure-JAX reference (eval-mode dropout == identity).
    ref = jnp.take(tok_tbl, tokens, axis=0) + pos_tbl[:S][None, :, :]

    # 1) VMEM-resident-table fast path (default for this small vocab).
    out_resident = jax.block_until_ready(transformer_embedding(tokens, tok_tbl, pos_tbl))
    assert out_resident.shape == (B, S, d_model)
    assert jnp.allclose(out_resident, ref, atol=1e-6), "resident-table path mismatch"

    # 2) Large-vocab HBM-gather path (forced), exercising the coalesced-wait DMA gather.
    out_hbm = jax.block_until_ready(
        transformer_embedding(tokens, tok_tbl, pos_tbl, table_vmem_budget_bytes=0))
    assert jnp.allclose(out_hbm, ref, atol=1e-6), "hbm-gather path mismatch"

    print("KERNEL_OK")
</pallas_src>

<mosaic_0001>
module attributes {stable_mosaic.version = 11 : i64} {
  func.func @kernel(%arg0: i32, %arg1: i32, %arg2: memref<16xi32, #tpu.memory_space<smem>>, %arg3: memref<32x32xf32, #tpu.memory_space<vmem>>, %arg4: memref<8x32xf32, #tpu.memory_space<vmem>>, %arg5: memref<1x8x32xf32, #tpu.memory_space<vmem>>, %arg6: memref<8x32xf32, #tpu.memory_space<vmem>>) attributes {dimension_semantics = [#tpu.dimension_semantics<parallel>, #tpu.dimension_semantics<parallel>], iteration_bounds = array<i64: 1, 2>, scalar_prefetch = 1 : i64, scratch_operands = 1 : i64, tpu.core_type = #tpu.core_type<tc>, window_params = [{pipeline_mode = #tpu.pipeline_mode<synchronous>, transform_indices = @transform_0, window_bounds = array<i64: 32, 32>}, {transform_indices = @transform_1, window_bounds = array<i64: 8, 32>}, {transform_indices = @transform_2, window_bounds = array<i64: 1, 8, 32>}]} {
    %c8_i32 = arith.constant 8 : i32
    %0 = arith.muli %arg1, %c8_i32 : i32
    %c8_i32_0 = arith.constant 8 : i32
    %1 = arith.muli %arg0, %c8_i32_0 : i32
    %2 = arith.addi %0, %1 : i32
    %c0_i32 = arith.constant 0 : i32
    %3 = arith.addi %2, %c0_i32 : i32
    %4 = arith.index_cast %3 : i32 to index
    %5 = memref.load %arg2[%4] : memref<16xi32, #tpu.memory_space<smem>>
    %6 = arith.index_cast %5 : i32 to index
    %c0 = arith.constant 0 : index
    %7 = vector.load %arg3[%6, %c0] : memref<32x32xf32, #tpu.memory_space<vmem>>, vector<1x32xf32>
    %8 = vector.shape_cast %7 : vector<1x32xf32> to vector<32xf32>
    %c0_1 = arith.constant 0 : index
    %c0_2 = arith.constant 0 : index
    %9 = vector.load %arg6[%c0_1, %c0_2] : memref<8x32xf32, #tpu.memory_space<vmem>>, vector<1x32xf32>
    %10 = vector.shape_cast %9 : vector<1x32xf32> to vector<32xf32>
    %11 = vector.shape_cast %8 : vector<32xf32> to vector<1x32xf32>
    tpu.vector_store %arg6[%c0_1, %c0_2], %11 {strides = array<i32>} : memref<8x32xf32, #tpu.memory_space<vmem>>, vector<1x32xf32>,
    %c1_i32 = arith.constant 1 : i32
    %12 = arith.addi %2, %c1_i32 : i32
    %13 = arith.index_cast %12 : i32 to index
    %14 = memref.load %arg2[%13] : memref<16xi32, #tpu.memory_space<smem>>
    %15 = arith.index_cast %14 : i32 to index
    %c0_3 = arith.constant 0 : index
    %16 = vector.load %arg3[%15, %c0_3] : memref<32x32xf32, #tpu.memory_space<vmem>>, vector<1x32xf32>
    %17 = vector.shape_cast %16 : vector<1x32xf32> to vector<32xf32>
    %c1 = arith.constant 1 : index
    %c0_4 = arith.constant 0 : index
    %18 = vector.load %arg6[%c1, %c0_4] : memref<8x32xf32, #tpu.memory_space<vmem>>, vector<1x32xf32>
    %19 = vector.shape_cast %18 : vector<1x32xf32> to vector<32xf32>
    %20 = vector.shape_cast %17 : vector<32xf32> to vector<1x32xf32>
    tpu.vector_store %arg6[%c1, %c0_4], %20 {strides = array<i32>} : memref<8x32xf32, #tpu.memory_space<vmem>>, vector<1x32xf32>,
    %c2_i32 = arith.constant 2 : i32
    %21 = arith.addi %2, %c2_i32 : i32
    %22 = arith.index_cast %21 : i32 to index
    %23 = memref.load %arg2[%22] : memref<16xi32, #tpu.memory_space<smem>>
    %24 = arith.index_cast %23 : i32 to index
    %c0_5 = arith.constant 0 : index
    %25 = vector.load %arg3[%24, %c0_5] : memref<32x32xf32, #tpu.memory_space<vmem>>, vector<1x32xf32>
    %26 = vector.shape_cast %25 : vector<1x32xf32> to vector<32xf32>
    %c2 = arith.constant 2 : index
    %c0_6 = arith.constant 0 : index
    %27 = vector.load %arg6[%c2, %c0_6] : memref<8x32xf32, #tpu.memory_space<vmem>>, vector<1x32xf32>
    %28 = vector.shape_cast %27 : vector<1x32xf32> to vector<32xf32>
    %29 = vector.shape_cast %26 : vector<32xf32> to vector<1x32xf32>
    tpu.vector_store %arg6[%c2, %c0_6], %29 {strides = array<i32>} : memref<8x32xf32, #tpu.memory_space<vmem>>, vector<1x32xf32>,
    %c3_i32 = arith.constant 3 : i32
    %30 = arith.addi %2, %c3_i32 : i32
    %31 = arith.index_cast %30 : i32 to index
    %32 = memref.load %arg2[%31] : memref<16xi32, #tpu.memory_space<smem>>
    %33 = arith.index_cast %32 : i32 to index
    %c0_7 = arith.constant 0 : index
    %34 = vector.load %arg3[%33, %c0_7] : memref<32x32xf32, #tpu.memory_space<vmem>>, vector<1x32xf32>
    %35 = vector.shape_cast %34 : vector<1x32xf32> to vector<32xf32>
    %c3 = arith.constant 3 : index
    %c0_8 = arith.constant 0 : index
    %36 = vector.load %arg6[%c3, %c0_8] : memref<8x32xf32, #tpu.memory_space<vmem>>, vector<1x32xf32>
    %37 = vector.shape_cast %36 : vector<1x32xf32> to vector<32xf32>
    %38 = vector.shape_cast %35 : vector<32xf32> to vector<1x32xf32>
    tpu.vector_store %arg6[%c3, %c0_8], %38 {strides = array<i32>} : memref<8x32xf32, #tpu.memory_space<vmem>>, vector<1x32xf32>,
    %c4_i32 = arith.constant 4 : i32
    %39 = arith.addi %2, %c4_i32 : i32
    %40 = arith.index_cast %39 : i32 to index
    %41 = memref.load %arg2[%40] : memref<16xi32, #tpu.memory_space<smem>>
    %42 = arith.index_cast %41 : i32 to index
    %c0_9 = arith.constant 0 : index
    %43 = vector.load %arg3[%42, %c0_9] : memref<32x32xf32, #tpu.memory_space<vmem>>, vector<1x32xf32>
    %44 = vector.shape_cast %43 : vector<1x32xf32> to vector<32xf32>
    %c4 = arith.constant 4 : index
    %c0_10 = arith.constant 0 : index
    %45 = vector.load %arg6[%c4, %c0_10] : memref<8x32xf32, #tpu.memory_space<vmem>>, vector<1x32xf32>
    %46 = vector.shape_cast %45 : vector<1x32xf32> to vector<32xf32>
    %47 = vector.shape_cast %44 : vector<32xf32> to vector<1x32xf32>
    tpu.vector_store %arg6[%c4, %c0_10], %47 {strides = array<i32>} : memref<8x32xf32, #tpu.memory_space<vmem>>, vector<1x32xf32>,
    %c5_i32 = arith.constant 5 : i32
    %48 = arith.addi %2, %c5_i32 : i32
    %49 = arith.index_cast %48 : i32 to index
    %50 = memref.load %arg2[%49] : memref<16xi32, #tpu.memory_space<smem>>
    %51 = arith.index_cast %50 : i32 to index
    %c0_11 = arith.constant 0 : index
    %52 = vector.load %arg3[%51, %c0_11] : memref<32x32xf32, #tpu.memory_space<vmem>>, vector<1x32xf32>
    %53 = vector.shape_cast %52 : vector<1x32xf32> to vector<32xf32>
    %c5 = arith.constant 5 : index
    %c0_12 = arith.constant 0 : index
    %54 = vector.load %arg6[%c5, %c0_12] : memref<8x32xf32, #tpu.memory_space<vmem>>, vector<1x32xf32>
    %55 = vector.shape_cast %54 : vector<1x32xf32> to vector<32xf32>
    %56 = vector.shape_cast %53 : vector<32xf32> to vector<1x32xf32>
    tpu.vector_store %arg6[%c5, %c0_12], %56 {strides = array<i32>} : memref<8x32xf32, #tpu.memory_space<vmem>>, vector<1x32xf32>,
    %c6_i32 = arith.constant 6 : i32
    %57 = arith.addi %2, %c6_i32 : i32
    %58 = arith.index_cast %57 : i32 to index
    %59 = memref.load %arg2[%58] : memref<16xi32, #tpu.memory_space<smem>>
    %60 = arith.index_cast %59 : i32 to index
    %c0_13 = arith.constant 0 : index
    %61 = vector.load %arg3[%60, %c0_13] : memref<32x32xf32, #tpu.memory_space<vmem>>, vector<1x32xf32>
    %62 = vector.shape_cast %61 : vector<1x32xf32> to vector<32xf32>
    %c6 = arith.constant 6 : index
    %c0_14 = arith.constant 0 : index
    %63 = vector.load %arg6[%c6, %c0_14] : memref<8x32xf32, #tpu.memory_space<vmem>>, vector<1x32xf32>
    %64 = vector.shape_cast %63 : vector<1x32xf32> to vector<32xf32>
    %65 = vector.shape_cast %62 : vector<32xf32> to vector<1x32xf32>
    tpu.vector_store %arg6[%c6, %c0_14], %65 {strides = array<i32>} : memref<8x32xf32, #tpu.memory_space<vmem>>, vector<1x32xf32>,
    %c7_i32 = arith.constant 7 : i32
    %66 = arith.addi %2, %c7_i32 : i32
    %67 = arith.index_cast %66 : i32 to index
    %68 = memref.load %arg2[%67] : memref<16xi32, #tpu.memory_space<smem>>
    %69 = arith.index_cast %68 : i32 to index
    %c0_15 = arith.constant 0 : index
    %70 = vector.load %arg3[%69, %c0_15] : memref<32x32xf32, #tpu.memory_space<vmem>>, vector<1x32xf32>
    %71 = vector.shape_cast %70 : vector<1x32xf32> to vector<32xf32>
    %c7 = arith.constant 7 : index
    %c0_16 = arith.constant 0 : index
    %72 = vector.load %arg6[%c7, %c0_16] : memref<8x32xf32, #tpu.memory_space<vmem>>, vector<1x32xf32>
    %73 = vector.shape_cast %72 : vector<1x32xf32> to vector<32xf32>
    %74 = vector.shape_cast %71 : vector<32xf32> to vector<1x32xf32>
    tpu.vector_store %arg6[%c7, %c0_16], %74 {strides = array<i32>} : memref<8x32xf32, #tpu.memory_space<vmem>>, vector<1x32xf32>,
    %c0_17 = arith.constant 0 : index
    %c0_18 = arith.constant 0 : index
    %75 = vector.load %arg6[%c0_17, %c0_18] : memref<8x32xf32, #tpu.memory_space<vmem>>, vector<8x32xf32>
    %c0_19 = arith.constant 0 : index
    %c0_20 = arith.constant 0 : index
    %76 = vector.load %arg4[%c0_19, %c0_20] : memref<8x32xf32, #tpu.memory_space<vmem>>, vector<8x32xf32>
    %77 = arith.addf %75, %76 : vector<8x32xf32>
    %c0_21 = arith.constant 0 : index
    %c0_22 = arith.constant 0 : index
    %c0_23 = arith.constant 0 : index
    %78 = vector.load %arg5[%c0_21, %c0_22, %c0_23] : memref<1x8x32xf32, #tpu.memory_space<vmem>>, vector<1x8x32xf32>
    %79 = vector.shape_cast %78 : vector<1x8x32xf32> to vector<8x32xf32>
    %80 = vector.shape_cast %77 : vector<8x32xf32> to vector<1x8x32xf32>
    tpu.vector_store %arg5[%c0_21, %c0_22, %c0_23], %80 {strides = array<i32>} : memref<1x8x32xf32, #tpu.memory_space<vmem>>, vector<1x8x32xf32>,
    return
  }
  func.func @transform_0(%arg0: i32, %arg1: i32, %arg2: memref<16xi32, #tpu.memory_space<smem>>) -> (i32, i32) {
    %c0_i32 = arith.constant 0 : i32
    %c0_i32_0 = arith.constant 0 : i32
    %c0_i32_1 = arith.constant 0 : i32
    return %c0_i32, %c0_i32_0 : i32, i32
  }
  func.func @transform_1(%arg0: i32, %arg1: i32, %arg2: memref<16xi32, #tpu.memory_space<smem>>) -> (i32, i32) {
    %c0_i32 = arith.constant 0 : i32
    %c0_i32_0 = arith.constant 0 : i32
    return %arg0, %c0_i32 : i32, i32
  }
  func.func @transform_2(%arg0: i32, %arg1: i32, %arg2: memref<16xi32, #tpu.memory_space<smem>>) -> (i32, i32, i32) {
    %c0_i32 = arith.constant 0 : i32
    %c0_i32_0 = arith.constant 0 : i32
    return %arg1, %arg0, %c0_i32 : i32, i32, i32
  }
}

</mosaic_0001>

<bundles_post_ra>
// kernel: tpu_custom_call.1
= control target key start
LH: loop header
LB: loop body
LE: loop exit
PB: predicated region body
PF: predicated region fallthrough
CT: control target
= control target key end

     0   :  { %s568_s12 = smov [#allocation4]   ;;  %s750_s0 = inlined_call_operand.hbm [shape: s32[16], index: 0, kind: input, shape index: {}]   ;;  %s751_s1 = inlined_call_operand.hbm [shape: f32[32,32], index: 1, kind: input, shape index: {}]   ;;  %s752_s2 = inlined_call_operand.hbm [shape: f32[16,32], index: 2, kind: input, shape index: {}]   ;;  %s753_s3 = inlined_call_operand.hbm [shape: f32[2,8,32], index: 3, kind: output, shape index: {}]  }
   0x1   :  { %9 = dma.hbm_to_smem %s750_s0, 16, %s568_s12, [#allocation3] }
   0x2   :  { %530 = dma.done.wait [#allocation3], 16 }
   0x3   :  { %531 = vsyncadd [#allocation3], 4294967280 }
   0x4   :  { %11 = sfence }
   0x5   :  { %12 = vsyncpa [#allocation6], 0 }
   0x6   :  { %13 = vsyncpa [#allocation9], 0 }
   0x7   :  { %14 = vsyncpa [#allocation7], 0 }
   0x8   :  { %16 = vsyncpa [#allocation7 + $0x1], 0  ;;  %s597_s15 = smov 0   ;;  %s599_s16 = smov 0  }
   0x9   :  { %s601_s17 = smov 0   ;;  %s603_s18 = smov 0  }
   0xa   :  { %s605_s19 = smov 0   ;;  %s607_s20 = smov 0  }
   0xb LB: > { %s327_s0 = sadd.s32 4294967295, %s566_s20   ;;  %s328_s21 = sadd.s32 4294967294, %s566_s20   ;;  %s566_s20 = sphi %s607_s20, %s22_s20   ;;  %s562_s19 = sphi %s605_s19, %s766_s19   ;;  %s558_s18 = sphi %s603_s18, %s765_s18   ;;  %s554_s17 = sphi %s601_s17, %s764_s17   ;;  %s550_s16 = sphi %s599_s16, %s763_s16   ;;  %s546_s15 = sphi %s597_s15, %s762_s15  }
   0xc   : > { %s31_s22 = sadd.s32 1, %s562_s19  ;;  %s90_s23 = sadd.s32 1, %s554_s17 }
   0xd   : > { %p32_p0 = scmp.ge.s32.totalorder %s31_s22, 2  ;;  %p100_p1 = scmp.ne.s32.totalorder %s554_s17, %s550_s16 }
   0xe   : > { %p101_p2 = scmp.eq.s32.totalorder %s327_s0, 1  ;;  %p106_p3 = scmp.ne.s32.totalorder %s550_s16, %s546_s15 }
   0xf   : > { %s768_s22 = smov (%p32_p0, %s31_s22), 0  ;;  %p107_p5 = scmp.eq.s32.totalorder %s328_s21, 1 }
  0x10   : > { %p637_p4 = por %p101_p2, %p100_p1  ;;  %s85_s25 = ssub.s32 %s562_s19, %s768_s22 }
  0x11   : > { %p329_p6 = scmp.ge.s32.totalorder %s566_s20, 1  ;;  %p88_p7 = scmp.eq.s32.totalorder %s85_s25, 0 }
  0x12   : > { %s755_s24 = scalar_select %p637_p4, 1, 0 }
  0x13   : > { %p644_p8 = por %p107_p5, %p106_p3  ;;  %p114_p9 = scmp.lt.s32.totalorder %s566_s20, 3 }
  0x14   : > { %s650_s27 = scalar_select %p88_p7, %s554_s17, %s90_s23  }
  0x15   : > { %s756_s26 = scalar_select %p644_p8, 1, 0 }
  0x16   : > { %p652_p10 = pnand %p329_p6, %p114_p9  ;;  %p656_p11 = scmp.eq.s32.totalorder %s327_s0, 0 }
  0x17   : > { %s569_s30 = smov [#allocation5]   ;;  %s570_s6 = smov [#allocation8]  }
  0x18   : > { %p351_p12 = pneg %p652_p10  ;;  %s126_s4 = sshll.u32 %s569_s30, 4  ;;  %s127_s4 = int_to_ptr.vmem [resolvable:$true] %s126_s4 }
  0x19   : > { %s142_s7 = sshll.u32 %s570_s6, 4  ;;  %s439_s8 = scalar_lea.vmem %s127_s4, 512  ;;  %s143_s7 = int_to_ptr.vmem [resolvable:$true] %s142_s7 }
  0x1a   : > { %p664_p13 = pnand %p656_p11, %p351_p12  ;;  %p440_p1 = scmp.ne.s32.totalorder %s127_s4, %s439_s8 }
  0x1b   : > { %p447_p5 = scmp.lt.s32.totalorder %s127_s4, %s127_s4  ;;  %p448_p6 = scmp.lt.s32.totalorder %s439_s8, %s439_s8 }
  0x1c   : > { %p430_p0 = pneg %p664_p13 }
  0x1d   : > { %p449_p7 = por %p448_p6, %p447_p5 }
  0x1e   : > { %p442_p2 = pnand %p440_p1, %p430_p0 }
  0x20   : > { %p443_p3 = pneg %p442_p2 }
  0x22   : > { %p450_p9 = pnand %p449_p7, %p443_p3 }
  0x24   : > { %453 = shalt.err (!%p450_p9)
}
  0x25   : > { %s571_s9 = smov 128   ;;  %s572_s10 = smov 8  }
  0x26   : > { %354 = dma.hbm_to_vmem [thread:$0]  (!%p664_p13), %s751_s1, 512, %s127_s4, [#allocation6], %s571_s9, %s571_s9, %s572_s10  }
  0x27   : > { %s465_s13 = scalar_lea.vmem %s143_s7, 128  ;;  %p473_p8 = scmp.lt.s32.totalorder %s143_s7, %s143_s7 }
  0x28   : > { %p466_p12 = scmp.ne.s32.totalorder %s143_s7, %s465_s13  ;;  %p474_p4 = scmp.lt.s32.totalorder %s465_s13, %s465_s13 }
  0x2a   : > { %p468_p1 = pnand %p466_p12, %p430_p0  ;;  %p475_p5 = por %p474_p4, %p473_p8 }
  0x2c   : > { %p469_p2 = pneg %p468_p1 }
  0x2e   : > { %p476_p3 = pnand %p475_p5, %p469_p2 }
  0x30   : > { %479 = shalt.err (!%p476_p3)
}
  0x31   : > { %357 = dma.hbm_to_vmem [thread:$0]  (!%p664_p13), %s752_s2, 128, %s143_s7, [#allocation9]  }
  0x32   : > { %155 = sbr.rel (%p652_p10) target bundleno = 98 (0x62), region = 28 }
  0x37   : > { %533 = dma.done.wait (%p656_p11), [#allocation6], 512  }
  0x38   : > { %535 = vsyncadd (%p656_p11), [#allocation6], 4294966784 }
  0x39   : > { %537 = dma.done.wait (%p656_p11), [#allocation9], 128  }
  0x3a   : > { %539 = vsyncadd (%p656_p11), [#allocation9], 4294967168  ;;  %s336_s21 = sshll.u32 %s558_s18, 3  ;;  %vm182_vm0 = vcmask 253952   ;;  %v220_v8 = vld [vmem:[#allocation8] sm:$0xff]  ;;  %vm222_vm1 = vcmask 261120  }
  0x3b   : > { %s179_s23 = sld [smem:[#allocation4 + %s336_s21]]  ;;  %s184_s25 = sadd.s32 1, %s336_s21 }
  0x3c   : > { %s185_s30 = sld [smem:[#allocation4 + %s184_s25]]  ;;  %s189_s4 = sadd.s32 2, %s336_s21 }
  0x3d   : > { %s190_s28 = sld [smem:[#allocation4 + %s189_s4]]  ;;  %s194_s5 = sadd.s32 3, %s336_s21 }
  0x3e   : > { %s195_s6 = sld [smem:[#allocation4 + %s194_s5]]  ;;  %s199_s7 = sadd.s32 4, %s336_s21 }
  0x3f   : > { %s200_s8 = sld [smem:[#allocation4 + %s199_s7]]  ;;  %s204_s9 = sadd.s32 5, %s336_s21 }
  0x40   : > { %s205_s10 = sld [smem:[#allocation4 + %s204_s9]]  ;;  %s209_s11 = sadd.s32 6, %s336_s21 }
  0x41   : > { %s210_s12 = sld [smem:[#allocation4 + %s209_s11]]  ;;  %s180_s13 = scalar_lea.vmem [#allocation5], %s179_s23 }
  0x42   : > { %v181_v0 = vld [vmem:[%s180_s13] sm:$0x1]  ;;  %s214_s29 = sadd.s32 7, %s336_s21  ;;  %s186_s14 = scalar_lea.vmem [#allocation5], %s185_s30 }
  0x43   : > { %183 = vst.msk [vmem:[#allocation2] sm:$0x1] %vm182_vm0, %v181_v0  ;;  %v187_v1 = vld [vmem:[%s186_s14] sm:$0x1]  ;;  %s215_s0 = sld [smem:[#allocation4 + %s214_s29]]  ;;  %s191_s25 = scalar_lea.vmem [#allocation5], %s190_s28 }
  0x44   : > { %188 = vst.msk [vmem:[#allocation2 + $0x1] sm:$0x1] %vm182_vm0, %v187_v1  ;;  %v192_v2 = vld [vmem:[%s191_s25] sm:$0x1]  ;;  %s196_s4 = scalar_lea.vmem [#allocation5], %s195_s6  ;;  %s173_s23 = sand.u32 1, %s550_s16  }
  0x45   : > { %193 = vst.msk [vmem:[#allocation2 + $0x2] sm:$0x1] %vm182_vm0, %v192_v2  ;;  %v197_v3 = vld [vmem:[%s196_s4] sm:$0x1]  ;;  %s201_s5 = scalar_lea.vmem [#allocation5], %s200_s8  ;;  %s335_s28 = sshll.u32 %s173_s23, 3 }
  0x46   : > { %198 = vst.msk [vmem:[#allocation2 + $0x3] sm:$0x1] %vm182_vm0, %v197_v3  ;;  %v202_v4 = vld [vmem:[%s201_s5] sm:$0x1]  ;;  %s206_s21 = scalar_lea.vmem [#allocation5], %s205_s10  ;;  %s175_s6 = scalar_lea.vmem [#allocation10], %s335_s28 }
  0x47   : > { %203 = vst.msk [vmem:[#allocation2 + $0x4] sm:$0x1] %vm182_vm0, %v202_v4  ;;  %v207_v5 = vld [vmem:[%s206_s21] sm:$0x1]  ;;  %s211_s30 = scalar_lea.vmem [#allocation5], %s210_s12  ;;  %s239_s8 = sshll.u32 %s175_s6, 4  ;;  %s707_s8 = int_to_ptr.vmem [resolvable:$true] %s239_s8 }
  0x48   : > { %208 = vst.msk [vmem:[#allocation2 + $0x5] sm:$0x1] %vm182_vm0, %v207_v5  ;;  %v212_v6 = vld [vmem:[%s211_s30] sm:$0x1]  ;;  %s338_s9 = sshll.u32 %s558_s18, 7  ;;  %s225_s13 = scalar_lea.sflag [#allocation7], %s173_s23 }
  0x49   : > { %213 = vst.msk [vmem:[#allocation2 + $0x6] sm:$0x1] %vm182_vm0, %v212_v6  ;;  %s216_s7 = scalar_lea.vmem [#allocation5], %s215_s0  ;;  %s237_s12 = scalar_lea.hbm %s753_s3, %s338_s9 }
  0x4a   : > { %v217_v7 = vld [vmem:[%s216_s7] sm:$0x1]  ;;  %s480_s29 = scalar_lea.vmem %s707_s8, 128  ;;  %p760_p8 = scmp.ne.s32.totalorder %s755_s24, 0 }
  0x4b   : > { %218 = vst.msk [vmem:[#allocation2 + $0x7] sm:$0x1] %vm182_vm0, %v217_v7  ;;  %p481_p4 = scmp.ne.s32.totalorder %s707_s8, %s480_s29  ;;  %s573_s18 = smov [#allocation10]  }
  0x4c   : > { %s484_s14 = sshll.u32 %s573_s18, 4  ;;  %s485_s14 = int_to_ptr.vmem [resolvable:$false] %s484_s14 }
  0x4d   : > { %p482_p10 = pnand %p481_p4, %p760_p8  ;;  %s486_s0 = scalar_lea.vmem %s485_s14, 256 }
  0x4e   : > { %p487_p13 = scmp.lt.s32.totalorder %s707_s8, %s485_s14  ;;  %p488_p0 = scmp.lt.s32.totalorder %s486_s0, %s480_s29 }
  0x4f   : > { %p483_p11 = pneg %p482_p10 }
  0x50   : > { %p489_p6 = por %p488_p0, %p487_p13 }
  0x52   : > { %v219_v9 = vld [vmem:[#allocation2] sm:$0xff]  ;;  %p490_p7 = pnand %p489_p6, %p483_p11 }
  0x53   : > { %v221_v10 = vadd.f32 %v220_v8, %v219_v9 }
  0x55   : > { %223 = vst.msk [vmem:[%s175_s6] sm:$0xff] %vm222_vm1, %v221_v10 }
  0x56   : > { %493 = shalt.err (!%p490_p7)
}
  0x57   : > { %s494_s25 = scalar_lea.hbm %s237_s12, 128  ;;  %s498_s23 = scalar_lea.hbm %s753_s3, 256 }
  0x58   : > { %p495_p9 = scmp.ne.s32.totalorder %s237_s12, %s494_s25  ;;  %p499_p2 = scmp.lt.s32.totalorder %s237_s12, %s753_s3 }
  0x59   : > { %p500_p5 = scmp.lt.s32.totalorder %s498_s23, %s494_s25 }
  0x5a   : > { %p496_p12 = pnand %p495_p9, %p760_p8 }
  0x5b   : > { %p501_p3 = por %p500_p5, %p499_p2 }
  0x5c   : > { %p497_p1 = pneg %p496_p12 }
  0x5e   : > { %p502_p4 = pnand %p501_p3, %p497_p1 }
  0x60   : > { %505 = shalt.err (!%p502_p4)
}
  0x61   : > { %349 = dma.vmem_to_hbm [thread:$0]  (%p760_p8), %s707_s8, 128, %s237_s12, %s225_s13  }
  0x62 PF: > { %p366_p10 = scmp.ge.s32.totalorder %s566_s20, 2  ;;  %s251_s28 = sand.u32 1, %s546_s15  }
  0x63   : > { %p761_p11 = scmp.ne.s32.totalorder %s756_s26, 0  ;;  %s252_s7 = scalar_lea.sflag [#allocation7], %s251_s28 }
  0x65   : > { %p359_p13 = pnand %p366_p10, %p761_p11 }
  0x67   : > { %p360_p0 = pneg %p359_p13 }
  0x69   : > { %541 = dma.done.wait (%p360_p0), %s252_s7, 128  }
  0x6a   : > { %543 = vsyncadd (%p360_p0), %s252_s7, 4294967168  ;;  %s22_s20 = sadd.s32 1, %s566_s20   ;;  %s762_s15 = smov %s550_s16 }
  0x6b   : > { %p19_p6 = scmp.ge.s32.totalorder %s22_s20, 4   ;;  %s763_s16 = smov %s554_s17 }
  0x6c   : > { %s764_s17 = smov %s650_s27  ;;  %s765_s18 = smov %s562_s19 }
  0x6d   : > { %s766_s19 = smov %s768_s22  ;;  %21 = sbr.rel (!%p19_p6) target bundleno = 11 (0xb), region = 78 }
  0x72   :  { %257 = vsyncpa [#allocation6], 1 }
  0x73   :  { %259 = vsyncpa [#allocation6 + $0x1], 1 }
  0x74   :  { %260 = vsyncpa [#allocation9], 1 }
  0x75   :  { %261 = vsyncpa [#allocation7], 1 }
  0x76   :  { %263 = vsyncpa [#allocation7 + $0x1], 1 }

</bundles_post_ra>
